<compile_context>
chip_gen: v6e
topology: v6e:2x2x1
jax: 0.10.0
libtpu: 0.0.40
codegen_flags: <defaults>
</compile_context>

<pallas_src>
import functools

import jax
import jax.numpy as jnp
from jax import lax
from jax.experimental import pallas as pl
from jax.experimental.pallas import tpu as pltpu

_LANES = 128
_SUBLANES = 8
# Rows per inner strip: 512*128*4B = 256 KiB of f32 work per strip (bounds vreg
# live ranges / VMEM temporaries); multiple of 8/16/32 so it is legal for every
# dtype packing.
_STRIP_ROWS = 512
# 8192 rows * 128 lanes * 4B = 4 MiB per input per pipeline buffer; with two
# inputs double-buffered that is ~16 MiB of VMEM -- inside every generation's
# budget once vmem_limit_bytes is raised (v5e default scoped is only 16 MiB).
_MAX_TILE_ROWS = 8192


def _mse_partial_kernel(p_ref, t_ref, o_ref, *, total_rows, strip_rows):
    """Accumulate sum((p - t)^2) of this tile into the resident (8,128) output."""
    i = pl.program_id(0)
    tile_rows = p_ref.shape[0]
    n_strips = tile_rows // strip_rows

    @pl.when(i == 0)
    def _():
        o_ref[...] = jnp.zeros_like(o_ref)

    row0 = i * tile_rows  # global row index of the first row of this tile

    def strip_body(s, carry):
        start = pl.multiple_of(s * strip_rows, strip_rows)
        p = p_ref[pl.ds(start, strip_rows), :].astype(jnp.float32)
        t = t_ref[pl.ds(start, strip_rows), :].astype(jnp.float32)
        d = p - t
        # Mask rows past the logical end of the data: the last Pallas tile may
        # be ragged and its out-of-bounds rows contain unspecified values.
        rows = (row0 + start
                + lax.broadcasted_iota(jnp.int32, (strip_rows, _LANES), 0))
        d = jnp.where(rows < total_rows, d, 0.0)
        sq = d * d
        # Pure vreg-wise fold (strip_rows,128) -> (8,128); no cross-lane work.
        return carry + jnp.sum(
            sq.reshape(strip_rows // _SUBLANES, _SUBLANES, _LANES), axis=0)

    tile_sum = lax.fori_loop(
        0, n_strips, strip_body,
        jnp.zeros((_SUBLANES, _LANES), jnp.float32),
        unroll=True)
    o_ref[...] += tile_sum


@jax.jit
def mse_loss(predicts: jax.Array, targets: jax.Array) -> jax.Array:
    """torch.mean((predicts - targets) ** 2), computed with a Pallas TPU kernel."""
    assert predicts.shape == targets.shape, "MSELoss expects matching shapes"
    n = predicts.size
    if n == 0:
        # torch.mean of an empty tensor is nan.
        return jnp.full((), jnp.nan, dtype=predicts.dtype)

    p = predicts.reshape(-1)
    t = targets.reshape(-1)

    itemsize = jnp.dtype(predicts.dtype).itemsize
    # Minimum legal sublane count per dtype packing (f32:8, bf16:16, int8:32).
    min_rows = {4: _SUBLANES, 2: 16, 1: 32}.get(itemsize, _SUBLANES)
    pad_unit = min_rows * _LANES

    rem = n % pad_unit
    if rem:
        # TODO(synk): non-aligned sizes pay one zero-pad copy; a pl.ANY +
        # manual-DMA path would avoid it.  Zero padding contributes 0 to the
        # squared-difference sum, so no extra masking is needed for it.
        pad = pad_unit - rem
        p = jnp.pad(p, (0, pad))
        t = jnp.pad(t, (0, pad))

    rows = p.size // _LANES               # multiple of min_rows
    p2 = p.reshape(rows, _LANES)          # free bitcast of the full array
    t2 = t.reshape(rows, _LANES)

    if rows >= _MAX_TILE_ROWS:
        tile_rows = _MAX_TILE_ROWS
    elif rows >= _STRIP_ROWS:
        tile_rows = (rows // _STRIP_ROWS) * _STRIP_ROWS
    else:
        tile_rows = rows                  # single small tile, >= min_rows
    strip_rows = min(_STRIP_ROWS, tile_rows)
    n_tiles = pl.cdiv(rows, tile_rows)    # last tile may be ragged -> masked

    kernel = functools.partial(
        _mse_partial_kernel, total_rows=rows, strip_rows=strip_rows)

    partials = pl.pallas_call(
        kernel,
        out_shape=jax.ShapeDtypeStruct((_SUBLANES, _LANES), jnp.float32),
        grid_spec=pltpu.PrefetchScalarGridSpec(
            num_scalar_prefetch=0,
            grid=(n_tiles,),
            in_specs=[
                pl.BlockSpec((tile_rows, _LANES), lambda i: (i, 0)),
                pl.BlockSpec((tile_rows, _LANES), lambda i: (i, 0)),
            ],
            # Same output block every step -> resident VMEM accumulator.
            out_specs=pl.BlockSpec((_SUBLANES, _LANES), lambda i: (0, 0)),
        ),
        compiler_params=pltpu.CompilerParams(
            dimension_semantics=("arbitrary",),
            vmem_limit_bytes=40 * 1024 * 1024,
        ),
        cost_estimate=pl.CostEstimate(
            flops=3 * n,
            transcendentals=0,
            bytes_accessed=2 * n * itemsize + _SUBLANES * _LANES * 4,
        ),
    )(p2, t2)

    # Under jit the cross-lane reduce + divide fuse into one tiny epilogue op.
    return (jnp.sum(partials) / jnp.float32(n)).astype(predicts.dtype)


if __name__ == "__main__":
    key = jax.random.PRNGKey(0)
    k1, k2 = jax.random.split(key)
    # Small NCHW-shaped inputs, consistent with a typical conv-net output.
    predicts = jax.random.normal(k1, (2, 4, 16, 16), dtype=jnp.float32)
    targets = jax.random.normal(k2, (2, 4, 16, 16), dtype=jnp.float32)

    loss = mse_loss(predicts, targets)
    jax.block_until_ready(loss)

    # Sanity check against plain-JAX reference.
    ref = jnp.mean((predicts - targets) ** 2)
    assert jnp.allclose(loss, ref, rtol=1e-5, atol=1e-6), (loss, ref)

    print("KERNEL_OK")
</pallas_src>

<mosaic_0001>
module attributes {stable_mosaic.version = 11 : i64} {
  func.func @_mse_partial_kernel(%arg0: i32, %arg1: memref<16x128xf32, #tpu.memory_space<vmem>>, %arg2: memref<16x128xf32, #tpu.memory_space<vmem>>, %arg3: memref<8x128xf32, #tpu.memory_space<vmem>>) attributes {dimension_semantics = [#tpu.dimension_semantics<arbitrary>], iteration_bounds = array<i64: 1>, scalar_prefetch = 0 : i64, scratch_operands = 0 : i64, tpu.core_type = #tpu.core_type<tc>, window_params = [{transform_indices = @transform_0, window_bounds = array<i64: 16, 128>}, {transform_indices = @transform_1, window_bounds = array<i64: 16, 128>}, {pipeline_mode = #tpu.pipeline_mode<synchronous>, transform_indices = @transform_2, window_bounds = array<i64: 8, 128>}]} {
    %c0_i32 = arith.constant 0 : i32
    %0 = arith.cmpi eq, %arg0, %c0_i32 : i32
    %1 = arith.extui %0 : i1 to i32
    %c0_i32_0 = arith.constant 0 : i32
    %2 = arith.cmpi ne, %1, %c0_i32_0 : i32
    scf.if %2 {
      %cst_11 = arith.constant 0.000000e+00 : f32
      %27 = vector.broadcast %cst_11 : f32 to vector<8x128xf32>
      %c0_12 = arith.constant 0 : index
      %c0_13 = arith.constant 0 : index
      %28 = vector.load %arg3[%c0_12, %c0_13] : memref<8x128xf32, #tpu.memory_space<vmem>>, vector<8x128xf32>
      tpu.vector_store %arg3[%c0_12, %c0_13], %27 {strides = array<i32>} : memref<8x128xf32, #tpu.memory_space<vmem>>, vector<8x128xf32>,
    } else {
    }
    %c16_i32 = arith.constant 16 : i32
    %3 = arith.muli %arg0, %c16_i32 : i32
    %cst = arith.constant 0.000000e+00 : f32
    %4 = vector.broadcast %cst : f32 to vector<8x128xf32>
    %c0_i32_1 = arith.constant 0 : i32
    %c16_i32_2 = arith.constant 16 : i32
    %5 = arith.muli %c0_i32_1, %c16_i32_2 : i32
    %6 = tpu.assume_multiple %5, 16 : i32
    %7 = arith.index_cast %6 : i32 to index
    %c0 = arith.constant 0 : index
    %8 = vector.load %arg1[%7, %c0] : memref<16x128xf32, #tpu.memory_space<vmem>>, vector<16x128xf32>
    %9 = arith.index_cast %6 : i32 to index
    %c0_3 = arith.constant 0 : index
    %10 = vector.load %arg2[%9, %c0_3] : memref<16x128xf32, #tpu.memory_space<vmem>>, vector<16x128xf32>
    %11 = arith.subf %8, %10 : vector<16x128xf32>
    %12 = arith.addi %3, %6 : i32
    %13 = tpu.iota {dimensions = array<i32: 0>} : vector<16x128xi32>
    %14 = vector.broadcast %12 : i32 to vector<16x128xi32>
    %15 = arith.addi %14, %13 : vector<16x128xi32>
    %c16_i32_4 = arith.constant 16 : i32
    %16 = vector.broadcast %c16_i32_4 : i32 to vector<16x128xi32>
    %17 = arith.cmpi slt, %15, %16 : vector<16x128xi32>
    %cst_5 = arith.constant 0.000000e+00 : f32
    %18 = vector.broadcast %cst_5 : f32 to vector<16x128xf32>
    %19 = arith.select %17, %11, %18 : vector<16x128xi1>, vector<16x128xf32>
    %20 = arith.mulf %19, %19 : vector<16x128xf32>
    %21 = vector.shape_cast %20 : vector<16x128xf32> to vector<2x8x128xf32>
    %cst_6 = arith.constant dense<0.000000e+00> : vector<8x128xf32>
    %22 = vector.multi_reduction <add>, %21, %cst_6 [0] : vector<2x8x128xf32> to vector<8x128xf32>
    %23 = arith.addf %4, %22 : vector<8x128xf32>
    %c1_i32 = arith.constant 1 : i32
    %c0_7 = arith.constant 0 : index
    %c0_8 = arith.constant 0 : index
    %24 = vector.load %arg3[%c0_7, %c0_8] : memref<8x128xf32, #tpu.memory_space<vmem>>, vector<8x128xf32>
    %25 = arith.addf %24, %23 : vector<8x128xf32>
    %c0_9 = arith.constant 0 : index
    %c0_10 = arith.constant 0 : index
    %26 = vector.load %arg3[%c0_9, %c0_10] : memref<8x128xf32, #tpu.memory_space<vmem>>, vector<8x128xf32>
    tpu.vector_store %arg3[%c0_9, %c0_10], %25 {strides = array<i32>} : memref<8x128xf32, #tpu.memory_space<vmem>>, vector<8x128xf32>,
    return
  }
  func.func @transform_0(%arg0: i32) -> (i32, i32) {
    %c0_i32 = arith.constant 0 : i32
    %c0_i32_0 = arith.constant 0 : i32
    return %arg0, %c0_i32 : i32, i32
  }
  func.func @transform_1(%arg0: i32) -> (i32, i32) {
    %c0_i32 = arith.constant 0 : i32
    %c0_i32_0 = arith.constant 0 : i32
    return %arg0, %c0_i32 : i32, i32
  }
  func.func @transform_2(%arg0: i32) -> (i32, i32) {
    %c0_i32 = arith.constant 0 : i32
    %c0_i32_0 = arith.constant 0 : i32
    %c0_i32_1 = arith.constant 0 : i32
    return %c0_i32, %c0_i32_0 : i32, i32
  }
}

</mosaic_0001>

<bundles_post_ra>
// kernel: mse_loss.1
= control target key start
LH: loop header
LB: loop body
LE: loop exit
PB: predicated region body
PF: predicated region fallthrough
CT: control target
= control target key end

     0   :  { %s76_s0 = inlined_call_operand.vmem [shape: f32[16,128], index: 0, kind: input, shape index: {}]   ;;  %s77_s1 = inlined_call_operand.vmem [shape: f32[16,128], index: 1, kind: input, shape index: {}]   ;;  %s78_s2 = inlined_call_operand.vmem [shape: f32[8,128], index: 2, kind: output, shape index: {}]  }
   0x1   :  { %v17_v0 = vld [vmem:[%s76_s0] sm:$0xff]  ;;  %v18_v1 = vld [vmem:[%s76_s0 + $0x8] sm:$0xff] }
   0x2   :  { %v19_v2 = vld [vmem:[%s77_s1] sm:$0xff]  ;;  %v20_v3 = vld [vmem:[%s77_s1 + $0x8] sm:$0xff] }
   0x3   :  { %v21_v4 = vsub.f32 %v17_v0, %v19_v2  ;;  %v22_v5 = vsub.f32 %v18_v1, %v20_v3 }
   0x5   :  { %v34_v6 = vmul.f32 %v21_v4, %v21_v4  ;;  %v35_v7 = vmul.f32 %v22_v5, %v22_v5 }
   0x7   :  { %v36_v8 = vadd.f32 %v35_v7, %v34_v6 }
   0x9   :  { %40 = vst [vmem:[%s78_s2] sm:$0xff] %v36_v8 }

</bundles_post_ra>
